<compile_context>
chip_gen: v5e
topology: v5e:2x2
jax: 0.10.0
libtpu: 0.0.40
codegen_flags: <defaults>
</compile_context>

<pallas_src>
import jax
import jax.numpy as jnp
from jax.experimental import pallas as pl
from jax.experimental.pallas import tpu as pltpu

_LANE = 128


def _round_up(x, m):
    return (x + m - 1) // m * m


def _choose_tile_b(B, d, itemsize, vmem_budget_bytes):
    """Batch tile: double-buffered x tile fits the VMEM budget, tile rows are a
    multiple of 128 (lane-dense output), and >= 2 grid steps when possible."""
    b_pad = _round_up(max(B, 1), _LANE)
    cap = (vmem_budget_bytes // (2 * d * itemsize)) // _LANE * _LANE
    cap = max(cap, _LANE)
    tile_b = min(b_pad, cap, 4096)          # >=512 rows whenever B allows it
    if tile_b == b_pad and b_pad >= 2 * _LANE:
        # Split a single-step grid into two so "parallel" can use both v7x TCs.
        tile_b = max(_round_up(b_pad // 2, _LANE), _LANE)
    return tile_b


def _three_head_kernel(x_ref, w_ref, b_ref, t_ref, o_ref):
    # x_ref: (tile_b, d)   streamed input tile (f32 or bf16)
    # w_ref: (d, 128)      heads in columns 0..2, rest zero
    # b_ref: (1, 128)      f32 biases in columns 0..2, rest zero
    # t_ref: (1, tile_b)   lane-dense gate (f32)
    # o_ref: (1, tile_b)   lane-dense output row (f32)
    z = jnp.dot(x_ref[...], w_ref[...], preferred_element_type=jnp.float32)
    z = z + b_ref[...]                      # (tile_b, 128), f32
    zt = z.T                                # (128, tile_b): one XLU transpose -> lane-dense rows
    t = t_ref[...]                          # (1, tile_b)
    z_early = zt[0:1, :]
    z_late = zt[1:2, :]
    z_clip = zt[2:3, :]
    gated = z_early + t * (z_late - z_early)     # == early*(1-t) + late*t
    o_ref[...] = (gated + jnp.clip(z_clip, -1.0, 1.0)).astype(o_ref.dtype)


def model_forward(x, t, w_stack, b_stack, *, tile_b=None,
                  compute_dtype=jnp.float32,
                  vmem_budget_bytes=24 * 1024 * 1024):
    """x: (B, d); t: (B,); w_stack: (3, d) rows = [early, late, clipped];
    b_stack: (3,).  Returns (B,) float32."""
    B, d = x.shape
    itemsize = jnp.dtype(compute_dtype).itemsize
    if tile_b is None:
        tile_b = _choose_tile_b(B, d, itemsize, vmem_budget_bytes)
    b_pad = _round_up(B, tile_b)
    num_tiles = b_pad // tile_b

    x_c = x.astype(compute_dtype)
    t_f = t.astype(jnp.float32)
    if b_pad != B:
        x_c = jnp.pad(x_c, ((0, b_pad - B), (0, 0)))
        t_f = jnp.pad(t_f, (0, b_pad - B))
    t_row = t_f.reshape(1, b_pad)

    # Pre-transposed, lane-padded parameter slabs (hoists w.T out of the kernel;
    # padding N=3 -> 128 costs no extra MXU passes and makes layouts native).
    w_slab = jnp.zeros((d, _LANE), compute_dtype).at[:, :3].set(
        w_stack.T.astype(compute_dtype))
    b_slab = jnp.zeros((1, _LANE), jnp.float32).at[0, :3].set(
        b_stack.astype(jnp.float32))

    out = pl.pallas_call(
        _three_head_kernel,
        out_shape=jax.ShapeDtypeStruct((1, b_pad), jnp.float32),
        grid=(num_tiles,),
        in_specs=[
            # x stream; if profiling shows exposed DMA, add
            # pipeline_mode=pl.Buffered(3) here.
            pl.BlockSpec((tile_b, d), lambda i: (i, 0)),
            pl.BlockSpec((d, _LANE), lambda i: (0, 0)),
            pl.BlockSpec((1, _LANE), lambda i: (0, 0)),
            pl.BlockSpec((1, tile_b), lambda i: (0, i)),
        ],
        out_specs=pl.BlockSpec((1, tile_b), lambda i: (0, i)),
        compiler_params=pltpu.CompilerParams(
            dimension_semantics=("parallel",),
            vmem_limit_bytes=48 * 1024 * 1024,
        ),
    )(x_c, w_slab, b_slab, t_row)
    # TODO(synk): PyTorch .squeeze() returns a 0-d tensor when B == 1; this
    # wrapper always returns shape (B,).
    return out[0, :B]


def reference_forward(x, t, w_stack, b_stack):
    z = x @ w_stack.T + b_stack[None, :]          # (B, 3)
    early = z[:, 0] * (1.0 - t)
    late = z[:, 1] * t
    clipped = jnp.clip(z[:, 2], -1.0, 1.0)
    return early + late + clipped


if __name__ == "__main__":
    B, d = 8, 32
    key = jax.random.PRNGKey(0)
    kx, kt, kw, kb = jax.random.split(key, 4)

    x = jax.random.normal(kx, (B, d), dtype=jnp.float32)
    t = jax.random.uniform(kt, (B,), dtype=jnp.float32)

    # NOTE: the PyTorch __init__ zero-inits all weights/biases (output would be
    # identically zero -- verified in check 2 below).  Random params are used so
    # the kernel's compute path is exercised; forward() semantics are unchanged.
    w_stack = 0.1 * jax.random.normal(kw, (3, d), dtype=jnp.float32)  # rows: early, late, clipped
    b_stack = 0.1 * jax.random.normal(kb, (3,), dtype=jnp.float32)

    # 1) f32 path, small batch.
    out = jax.block_until_ready(model_forward(x, t, w_stack, b_stack))
    ref = reference_forward(x, t, w_stack, b_stack)
    assert out.shape == (B,)
    assert jnp.allclose(out, ref, atol=1e-5, rtol=1e-5), (out, ref)

    # 2) Faithful zero-init of the PyTorch module -> output identically zero.
    out0 = jax.block_until_ready(
        model_forward(x, t, jnp.zeros((3, d), jnp.float32), jnp.zeros((3,), jnp.float32)))
    assert jnp.allclose(out0, jnp.zeros((B,), jnp.float32)), out0

    # 3) Larger, non-aligned batch: exercises zero-padding + a multi-step grid.
    B2 = 513
    x2 = jax.random.normal(kx, (B2, d), dtype=jnp.float32)
    t2 = jax.random.uniform(kt, (B2,), dtype=jnp.float32)
    out2 = jax.block_until_ready(model_forward(x2, t2, w_stack, b_stack))
    ref2 = reference_forward(x2, t2, w_stack, b_stack)
    assert out2.shape == (B2,)
    assert jnp.allclose(out2, ref2, atol=1e-5, rtol=1e-5)

    # 4) bf16 streaming of x / w (halves HBM bytes for the dominant input).
    out_bf16 = jax.block_until_ready(
        model_forward(x2, t2, w_stack, b_stack, compute_dtype=jnp.bfloat16))
    ref_bf16 = reference_forward(
        x2.astype(jnp.bfloat16).astype(jnp.float32), t2,
        w_stack.astype(jnp.bfloat16).astype(jnp.float32), b_stack)
    assert jnp.allclose(out_bf16, ref_bf16, atol=5e-2, rtol=5e-2)

    print("KERNEL_OK")
</pallas_src>

<mosaic_0001>
module attributes {stable_mosaic.version = 11 : i64} {
  func.func @_three_head_kernel(%arg0: i32, %arg1: memref<128x32xf32, #tpu.memory_space<vmem>>, %arg2: memref<32x128xf32, #tpu.memory_space<vmem>>, %arg3: memref<1x128xf32, #tpu.memory_space<vmem>>, %arg4: memref<1x128xf32, #tpu.memory_space<vmem>>, %arg5: memref<1x128xf32, #tpu.memory_space<vmem>>) attributes {dimension_semantics = [#tpu.dimension_semantics<parallel>], iteration_bounds = array<i64: 1>, scalar_prefetch = 0 : i64, scratch_operands = 0 : i64, tpu.core_type = #tpu.core_type<tc>, window_params = [{transform_indices = @transform_0, window_bounds = array<i64: 128, 32>}, {pipeline_mode = #tpu.pipeline_mode<synchronous>, transform_indices = @transform_1, window_bounds = array<i64: 32, 128>}, {pipeline_mode = #tpu.pipeline_mode<synchronous>, transform_indices = @transform_2, window_bounds = array<i64: 1, 128>}, {transform_indices = @transform_3, window_bounds = array<i64: 1, 128>}, {transform_indices = @transform_4, window_bounds = array<i64: 1, 128>}]} {
    %c0 = arith.constant 0 : index
    %c0_0 = arith.constant 0 : index
    %0 = vector.load %arg1[%c0, %c0_0] : memref<128x32xf32, #tpu.memory_space<vmem>>, vector<128x32xf32>
    %c0_1 = arith.constant 0 : index
    %c0_2 = arith.constant 0 : index
    %1 = vector.load %arg2[%c0_1, %c0_2] : memref<32x128xf32, #tpu.memory_space<vmem>>, vector<32x128xf32>
    %cst = arith.constant dense<0.000000e+00> : vector<128x128xf32>
    %2 = tpu.matmul %0, %1, %cst {dimension_numbers = #tpu.dot_dimension_numbers<[1], [0], [0], [1], [0, 0, 1, 1], [], []>} : vector<128x32xf32>, vector<32x128xf32>, vector<128x128xf32> -> vector<128x128xf32>
    %c0_3 = arith.constant 0 : index
    %c0_4 = arith.constant 0 : index
    %3 = vector.load %arg3[%c0_3, %c0_4] : memref<1x128xf32, #tpu.memory_space<vmem>>, vector<1x128xf32>
    %4 = vector.broadcast %3 : vector<1x128xf32> to vector<128x128xf32>
    %5 = arith.addf %2, %4 : vector<128x128xf32>
    %6 = tpu.transpose %5, [1, 0] : vector<128x128xf32> -> vector<128x128xf32>
    %c0_5 = arith.constant 0 : index
    %c0_6 = arith.constant 0 : index
    %7 = vector.load %arg4[%c0_5, %c0_6] : memref<1x128xf32, #tpu.memory_space<vmem>>, vector<1x128xf32>
    %8 = vector.extract_strided_slice %6 {offsets = [0, 0], sizes = [1, 128], strides = [1, 1]} : vector<128x128xf32> to vector<1x128xf32>
    %9 = vector.extract_strided_slice %6 {offsets = [1, 0], sizes = [1, 128], strides = [1, 1]} : vector<128x128xf32> to vector<1x128xf32>
    %10 = vector.extract_strided_slice %6 {offsets = [2, 0], sizes = [1, 128], strides = [1, 1]} : vector<128x128xf32> to vector<1x128xf32>
    %11 = arith.subf %9, %8 : vector<1x128xf32>
    %12 = arith.mulf %7, %11 : vector<1x128xf32>
    %13 = arith.addf %8, %12 : vector<1x128xf32>
    %cst_7 = arith.constant -1.000000e+00 : f32
    %cst_8 = arith.constant 1.000000e+00 : f32
    %14 = vector.broadcast %cst_7 : f32 to vector<1x128xf32>
    %15 = arith.maximumf %14, %10 : vector<1x128xf32>
    %16 = vector.broadcast %cst_8 : f32 to vector<1x128xf32>
    %17 = arith.minimumf %16, %15 : vector<1x128xf32>
    %18 = arith.addf %13, %17 : vector<1x128xf32>
    %c0_9 = arith.constant 0 : index
    %c0_10 = arith.constant 0 : index
    %19 = vector.load %arg5[%c0_9, %c0_10] : memref<1x128xf32, #tpu.memory_space<vmem>>, vector<1x128xf32>
    tpu.vector_store %arg5[%c0_9, %c0_10], %18 {strides = array<i32>} : memref<1x128xf32, #tpu.memory_space<vmem>>, vector<1x128xf32>,
    return
  }
  func.func @transform_0(%arg0: i32) -> (i32, i32) {
    %c0_i32 = arith.constant 0 : i32
    %c0_i32_0 = arith.constant 0 : i32
    return %arg0, %c0_i32 : i32, i32
  }
  func.func @transform_1(%arg0: i32) -> (i32, i32) {
    %c0_i32 = arith.constant 0 : i32
    %c0_i32_0 = arith.constant 0 : i32
    %c0_i32_1 = arith.constant 0 : i32
    return %c0_i32, %c0_i32_0 : i32, i32
  }
  func.func @transform_2(%arg0: i32) -> (i32, i32) {
    %c0_i32 = arith.constant 0 : i32
    %c0_i32_0 = arith.constant 0 : i32
    %c0_i32_1 = arith.constant 0 : i32
    return %c0_i32, %c0_i32_0 : i32, i32
  }
  func.func @transform_3(%arg0: i32) -> (i32, i32) {
    %c0_i32 = arith.constant 0 : i32
    %c0_i32_0 = arith.constant 0 : i32
    return %c0_i32, %arg0 : i32, i32
  }
  func.func @transform_4(%arg0: i32) -> (i32, i32) {
    %c0_i32 = arith.constant 0 : i32
    %c0_i32_0 = arith.constant 0 : i32
    return %c0_i32, %arg0 : i32, i32
  }
}

</mosaic_0001>

<bundles_post_ra>
// kernel: tpu_custom_call.1
= control target key start
LH: loop header
LB: loop body
LE: loop exit
PB: predicated region body
PF: predicated region fallthrough
CT: control target
= control target key end

     0   :  { %vm42_vm0 = vcmask 261120   ;;  %s391_s0 = inlined_call_operand.vmem [shape: f32[128,32], index: 0, kind: input, shape index: {}]   ;;  %s392_s1 = inlined_call_operand.vmem [shape: f32[32,128], index: 1, kind: input, shape index: {}]   ;;  %s393_s2 = inlined_call_operand.vmem [shape: f32[1,128], index: 2, kind: input, shape index: {}]   ;;  %s394_s3 = inlined_call_operand.vmem [shape: f32[1,128], index: 3, kind: input, shape index: {}]   ;;  %s395_s4 = inlined_call_operand.hbm [shape: f32[1,128], index: 4, kind: output, shape index: {}]  }
   0x1   :  { %v37_v0 = vld [vmem:[%s392_s1 + $0x18] sm:$0xff]  ;;  %v36_v1 = vld [vmem:[%s392_s1 + $0x10] sm:$0xff]  ;;  %v35_v2 = vld [vmem:[%s392_s1 + $0x8] sm:$0xff] }
   0x2   :  { %103 = vmatpush.msra.mxu0 %v37_v0  ;;  %240 = vmatpush.msra.mxu1 %v37_v0  ;;  %v34_v3 = vld [vmem:[%s392_s1] sm:$0xff] }
   0x3   :  { %241 = vmatpush.msra.mxu2 %v37_v0  ;;  %242 = vmatpush.msra.mxu3 %v37_v0  ;;  %v18_v4 = vld [vmem:[%s391_s0] sm:$0xff] }
   0x4   :  { %104 = vmatpush.msra.mxu0 %v36_v1  ;;  %243 = vmatpush.msra.mxu1 %v36_v1  ;;  %v22_v5 = vld [vmem:[%s391_s0 + $0x20] sm:$0xff] }
   0x5   :  { %244 = vmatpush.msra.mxu2 %v36_v1  ;;  %245 = vmatpush.msra.mxu3 %v36_v1  ;;  %v26_v6 = vld [vmem:[%s391_s0 + $0x40] sm:$0xff] }
   0x6   :  { %105 = vmatpush.msra.mxu0 %v35_v2  ;;  %246 = vmatpush.msra.mxu1 %v35_v2  ;;  %v30_v7 = vld [vmem:[%s391_s0 + $0x60] sm:$0xff] }
   0x7   :  { %247 = vmatpush.msra.mxu2 %v35_v2  ;;  %248 = vmatpush.msra.mxu3 %v35_v2 }
   0x8   :  { %106 = vmatpush.msra.mxu0 %v34_v3  ;;  %249 = vmatpush.msra.mxu1 %v34_v3 }
   0x9   :  { %9 = vsyncpa [#allocation3], 0  ;;  %223 = vmatmul.msk.f32.vlgmr.msra.gmra.mxu0 %vm42_vm0, %v18_v4  ;;  %227 = vmatmul.msk.f32.vlgmr.msra.gmra.mxu1 %vm42_vm0, %v22_v5  ;;  %v19_v8 = vld [vmem:[%s391_s0 + $0x8] sm:$0xff]  ;;  %v20_v12 = vld [vmem:[%s391_s0 + $0x10] sm:$0xff]  ;;  %s280_s29 = smov [#allocation2]   ;;  %s214_s7 = sshll.u32 %s395_s4, 4  ;;  %s215_s7 = int_to_ptr.hbm [resolvable:$true] %s214_s7 }
   0xa   :  { %250 = vmatpush.msra.mxu2 %v34_v3  ;;  %251 = vmatpush.msra.mxu3 %v34_v3  ;;  %v23_v9 = vld [vmem:[%s391_s0 + $0x28] sm:$0xff]  ;;  %v24_v13 = vld [vmem:[%s391_s0 + $0x30] sm:$0xff]  ;;  %v21_v16 = vld [vmem:[%s391_s0 + $0x18] sm:$0xff]  ;;  %s212_s30 = sshll.u32 %s280_s29, 4  ;;  %s213_s30 = int_to_ptr.vmem [resolvable:$true] %s212_s30 }
   0xb   :  { %231 = vmatmul.msk.f32.vlgmr.msra.gmra.mxu2 %vm42_vm0, %v26_v6  ;;  %235 = vmatmul.msk.f32.vlgmr.msra.gmra.mxu3 %vm42_vm0, %v30_v7  ;;  %v27_v10 = vld [vmem:[%s391_s0 + $0x48] sm:$0xff]  ;;  %v28_v14 = vld [vmem:[%s391_s0 + $0x50] sm:$0xff]  ;;  %v25_v17 = vld [vmem:[%s391_s0 + $0x38] sm:$0xff] }
   0xc   :  { %v31_v11 = vld [vmem:[%s391_s0 + $0x68] sm:$0xff]  ;;  %v32_v15 = vld [vmem:[%s391_s0 + $0x70] sm:$0xff]  ;;  %v29_v18 = vld [vmem:[%s391_s0 + $0x58] sm:$0xff] }
   0xd   :  { %v33_v19 = vld [vmem:[%s391_s0 + $0x78] sm:$0xff]  ;;  %v253_v20 = vld [vmem:[%s393_s2] ss:$0 sm:$0xff] }
   0xe   :  { %v188_v56 = vld [vmem:[%s394_s3] sm:$0x1] }
  0x11   :  { %224 = vmatmul.msk.f32.gmra.mxu0 %vm42_vm0, %v19_v8  ;;  %228 = vmatmul.msk.f32.gmra.mxu1 %vm42_vm0, %v23_v9 }
  0x13   :  { %232 = vmatmul.msk.f32.gmra.mxu2 %vm42_vm0, %v27_v10  ;;  %236 = vmatmul.msk.f32.gmra.mxu3 %vm42_vm0, %v31_v11 }
  0x19   :  { %225 = vmatmul.msk.f32.gmra.mxu0 %vm42_vm0, %v20_v12  ;;  %229 = vmatmul.msk.f32.gmra.mxu1 %vm42_vm0, %v24_v13 }
  0x1b   :  { %233 = vmatmul.msk.f32.gmra.mxu2 %vm42_vm0, %v28_v14  ;;  %237 = vmatmul.msk.f32.gmra.mxu3 %vm42_vm0, %v32_v15 }
  0x21   :  { %226 = vmatmul.msk.f32.gmra.mxu0 %vm42_vm0, %v21_v16  ;;  %230 = vmatmul.msk.f32.gmra.mxu1 %vm42_vm0, %v25_v17 }
  0x23   :  { %234 = vmatmul.msk.f32.gmra.mxu2 %vm42_vm0, %v29_v18  ;;  %238 = vmatmul.msk.f32.gmra.mxu3 %vm42_vm0, %v33_v19 }
  0x86   :  { %v108_v21 = vpop.f32.mrf.mxu0  ;;  %v120_v27 = vpop.f32.mrf.mxu1 }
  0x87   :  { %v109_v22 = vadd.f32 %v253_v20, %v108_v21  ;;  %v121_v30 = vadd.f32 %v253_v20, %v120_v27 }
  0x89   :  { %156 = vxpose.xlu0.b32.start [1/16] (narrow) %v109_v22, 8 }
  0x8e   :  { %v111_v23 = vpop.f32.mrf.mxu0  ;;  %v123_v31 = vpop.f32.mrf.mxu1 }
  0x8f   :  { %v112_v24 = vadd.f32 %v253_v20, %v111_v23  ;;  %v124_v32 = vadd.f32 %v253_v20, %v123_v31  ;;  %v132_v36 = vpop.f32.mrf.mxu2  ;;  %v144_v44 = vpop.f32.mrf.mxu3 }
  0x90   :  { %v133_v38 = vadd.f32 %v253_v20, %v132_v36  ;;  %v145_v46 = vadd.f32 %v253_v20, %v144_v44 }
  0x91   :  { %157 = vxpose.xlu0.b32.cont [2/16] (narrow) %v112_v24, 8 }
  0x96   :  { %v114_v25 = vpop.f32.mrf.mxu0  ;;  %v126_v33 = vpop.f32.mrf.mxu1 }
  0x97   :  { %v115_v26 = vadd.f32 %v253_v20, %v114_v25  ;;  %v127_v34 = vadd.f32 %v253_v20, %v126_v33  ;;  %v135_v39 = vpop.f32.mrf.mxu2  ;;  %v147_v47 = vpop.f32.mrf.mxu3 }
  0x98   :  { %v136_v40 = vadd.f32 %v253_v20, %v135_v39  ;;  %v148_v48 = vadd.f32 %v253_v20, %v147_v47 }
  0x99   :  { %158 = vxpose.xlu0.b32.cont [3/16] (narrow) %v115_v26, 8 }
  0x9e   :  { %v117_v28 = vpop.f32.mrf.mxu0  ;;  %v129_v35 = vpop.f32.mrf.mxu1 }
  0x9f   :  { %v118_v29 = vadd.f32 %v253_v20, %v117_v28  ;;  %v130_v37 = vadd.f32 %v253_v20, %v129_v35  ;;  %v138_v41 = vpop.f32.mrf.mxu2  ;;  %v150_v49 = vpop.f32.mrf.mxu3 }
  0xa0   :  { %v139_v42 = vadd.f32 %v253_v20, %v138_v41  ;;  %v151_v50 = vadd.f32 %v253_v20, %v150_v49 }
  0xa1   :  { %159 = vxpose.xlu0.b32.cont [4/16] (narrow) %v118_v29, 8 }
  0xa7   :  { %v141_v43 = vpop.f32.mrf.mxu2  ;;  %v153_v51 = vpop.f32.mrf.mxu3 }
  0xa8   :  { %v142_v45 = vadd.f32 %v253_v20, %v141_v43  ;;  %v154_v52 = vadd.f32 %v253_v20, %v153_v51 }
  0xa9   :  { %160 = vxpose.xlu0.b32.cont [5/16] (narrow) %v121_v30, 8 }
  0xb1   :  { %161 = vxpose.xlu0.b32.cont [6/16] (narrow) %v124_v32, 8 }
  0xb9   :  { %162 = vxpose.xlu0.b32.cont [7/16] (narrow) %v127_v34, 8 }
  0xc1   :  { %163 = vxpose.xlu0.b32.cont [8/16] (narrow) %v130_v37, 8 }
  0xc9   :  { %164 = vxpose.xlu0.b32.cont [9/16] (narrow) %v133_v38, 8 }
  0xd1   :  { %165 = vxpose.xlu0.b32.cont [10/16] (narrow) %v136_v40, 8 }
  0xd9   :  { %166 = vxpose.xlu0.b32.cont [11/16] (narrow) %v139_v42, 8 }
  0xe1   :  { %167 = vxpose.xlu0.b32.cont [12/16] (narrow) %v142_v45, 8 }
  0xe9   :  { %168 = vxpose.xlu0.b32.cont [13/16] (narrow) %v145_v46, 8 }
  0xf1   :  { %169 = vxpose.xlu0.b32.cont [14/16] (narrow) %v148_v48, 8 }
  0xf9   :  { %170 = vxpose.xlu0.b32.cont [15/16] (narrow) %v151_v50, 8 }
 0x101   :  { %171 = vxpose.xlu0.b32.end [16/16] (narrow) %v154_v52, 8 }
 0x12d   :  { %v172_v53 = vpop.trf.xlu0 }
 0x12e   :  { %v190_v54 = vrot.slane %v172_v53, 7  ;;  %v239_v57 = vclamps-f32 %v172_v53, 1.0 }
 0x130   :  { %v192_v55 = vsub.f32 %v172_v53, %v190_v54  ;;  %v203_v61 = vrot.slane %v239_v57, 2 }
 0x132   :  { %194 = vst [vmem:[#allocation1] sm:$0xff] %v192_v55 }
 0x139   :  { %v196_v58 = vld [vmem:[#allocation1 + $0x1] ss:$9 sm:$0xff] }
 0x13a   :  { %v198_v59 = vmul.f32 %v196_v58, %v188_v56 }
 0x13c   :  { %v199_v60 = vadd.f32 %v198_v59, %v172_v53 }
 0x13e   :  { %v205_v62 = vadd.f32 %v203_v61, %v199_v60 }
 0x140   :  { %206 = vst [vmem:[#allocation2] sm:$0x1] %v205_v62 }
 0x141   :  { %217 = dma.vmem_to_hbm [thread:$0]  %s213_s30, 16, %s215_s7, [#allocation3]  }
 0x142   :  { %278 = dma.done.wait [#allocation3], 16  }
 0x143   :  { %279 = vsyncadd [#allocation3], 4294967280 }
 0x144   :  { %222 = vsyncpa [#allocation3], 1 }

</bundles_post_ra>
